<compile_context>
chip_gen: v7x
topology: tpu7x:2x2x1
jax: 0.10.0
libtpu: 0.0.40
codegen_flags: <defaults>
</compile_context>

<pallas_src>
import jax
import jax.numpy as jnp
from jax import lax
from jax.experimental import pallas as pl
from jax.experimental.pallas import tpu as pltpu


# --------------------------------------------------------------------------- #
# Pallas kernel 1: fused "same" conv2d (+ folded-BN bias, optional ReLU/sigmoid)
# --------------------------------------------------------------------------- #
def conv2d_same_pallas(x, w, b, *, relu=False, sigmoid=False):
    """x: (N, Cin, H, W) f32, w: (Cout, Cin, k, k), b: (Cout,). stride 1, pad k//2."""
    N, Cin, H, W = x.shape
    Cout, _, k, _ = w.shape
    p = k // 2
    Wp = W + 2 * p                     # padded width (output kept in this layout)
    Lout = H * Wp                      # lane-dense flattened output length
    Hp = H + 2 * p + 1                 # +1 guard row so every tap slice stays in range
    Lin = Hp * Wp

    # Glue: zero-pad once, flatten spatial onto the lane axis (NCHW-native).
    xp = jnp.pad(x, ((0, 0), (0, 0), (p, p + 1), (p, p)))
    xf = xp.reshape(N, Cin, Lin)
    # Per-tap weight matrices (k*k, Cout, Cin); bias as a (Cout, 1) sublane column.
    wt = jnp.transpose(w, (2, 3, 0, 1)).reshape(k * k, Cout, Cin)
    bt = b.reshape(Cout, 1).astype(jnp.float32)

    def kernel(x_ref, w_ref, b_ref, o_ref):
        acc = jnp.zeros((Cout, Lout), jnp.float32)
        for dy in range(k):
            for dx in range(k):
                t = dy * k + dx
                off = dy * Wp + dx     # static lane offset of this tap
                acc = acc + jnp.dot(
                    w_ref[t], x_ref[0, :, pl.ds(off, Lout)],
                    preferred_element_type=jnp.float32)
        y = acc + b_ref[...]
        if relu:
            y = jnp.maximum(y, 0.0)
        if sigmoid:
            y = 1.0 / (1.0 + jnp.exp(-y))
        o_ref[0] = y.astype(o_ref.dtype)

    out_flat = pl.pallas_call(
        kernel,
        out_shape=jax.ShapeDtypeStruct((N, Cout, Lout), x.dtype),
        grid_spec=pltpu.PrefetchScalarGridSpec(
            num_scalar_prefetch=0,
            grid=(N,),
            in_specs=[
                pl.BlockSpec((1, Cin, Lin), lambda n: (n, 0, 0)),
                pl.BlockSpec((k * k, Cout, Cin), lambda n: (0, 0, 0)),
                pl.BlockSpec((Cout, 1), lambda n: (0, 0)),
            ],
            out_specs=pl.BlockSpec((1, Cout, Lout), lambda n: (n, 0, 0)),
        ),
        compiler_params=pltpu.CompilerParams(
            dimension_semantics=("parallel",)),
    )(xf, wt, bt)

    # Glue: drop the 2*p garbage columns of the width-padded output layout.
    return out_flat.reshape(N, Cout, H, Wp)[:, :, :, :W]


# --------------------------------------------------------------------------- #
# Pallas kernel 2: fc_loc = Linear(level*16, 16) -> Linear(16, 6), fused
# --------------------------------------------------------------------------- #
def _fc_loc_kernel(xs_ref, w1_ref, b1_ref, w2_ref, b2_ref, o_ref):
    h = jnp.dot(xs_ref[...], w1_ref[...],
                preferred_element_type=jnp.float32) + b1_ref[...]
    y = jnp.dot(h, w2_ref[...],
                preferred_element_type=jnp.float32) + b2_ref[...]
    o_ref[...] = y.astype(o_ref.dtype)


def fc_loc_pallas(xs, w1, b1, w2, b2):
    N, F = xs.shape
    H1 = w1.shape[0]          # 16
    O = w2.shape[0]           # 6
    w1t = jnp.transpose(w1)   # (F, 16)
    w2t = jnp.transpose(w2)   # (16, 6)
    b1r = b1.reshape(1, H1)
    b2r = b2.reshape(1, O)
    return pl.pallas_call(
        _fc_loc_kernel,
        out_shape=jax.ShapeDtypeStruct((N, O), xs.dtype),
        grid_spec=pltpu.PrefetchScalarGridSpec(
            num_scalar_prefetch=0,
            grid=(1,),
            in_specs=[
                pl.BlockSpec((N, F), lambda i: (0, 0)),
                pl.BlockSpec((F, H1), lambda i: (0, 0)),
                pl.BlockSpec((1, H1), lambda i: (0, 0)),
                pl.BlockSpec((H1, O), lambda i: (0, 0)),
                pl.BlockSpec((1, O), lambda i: (0, 0)),
            ],
            out_specs=pl.BlockSpec((N, O), lambda i: (0, 0)),
        ),
    )(xs, w1t, b1r, w2t, b2r)


# --------------------------------------------------------------------------- #
# Pallas kernel 3: fused channel softmax * gate  (out = lower * softmax(t, dim=1))
# --------------------------------------------------------------------------- #
def softmax_mul_pallas(t, lower):
    N, C, H, W = t.shape
    L = H * W                       # 256 -> lane-dense, unmasked stores
    tf = t.reshape(N, C, L)
    lf = lower.reshape(N, C, L)

    def kernel(t_ref, l_ref, o_ref):
        v = t_ref[0].astype(jnp.float32)                  # (C, L)
        m = jnp.max(v, axis=0, keepdims=True)             # sublane reduce (XLU)
        e = jnp.exp(v - m)                                # EUP
        s = jnp.sum(e, axis=0, keepdims=True)
        sm = e * pl.reciprocal(s, approx=False)
        o_ref[0] = (l_ref[0].astype(jnp.float32) * sm).astype(o_ref.dtype)

    out = pl.pallas_call(
        kernel,
        out_shape=jax.ShapeDtypeStruct((N, C, L), t.dtype),
        grid_spec=pltpu.PrefetchScalarGridSpec(
            num_scalar_prefetch=0,
            grid=(N,),
            in_specs=[
                pl.BlockSpec((1, C, L), lambda n: (n, 0, 0)),
                pl.BlockSpec((1, C, L), lambda n: (n, 0, 0)),
            ],
            out_specs=pl.BlockSpec((1, C, L), lambda n: (n, 0, 0)),
        ),
        compiler_params=pltpu.CompilerParams(
            dimension_semantics=("parallel",)),
    )(tf, lf)
    return out.reshape(N, C, H, W)


# --------------------------------------------------------------------------- #
# Plain-JAX glue (ops without a clean Pallas equivalent)
# --------------------------------------------------------------------------- #
def _fold_bn(w, b, gamma, beta, mean, var, eps=1e-5):
    scale = gamma / jnp.sqrt(var + eps)
    return w * scale[:, None, None, None], (b - mean) * scale + beta


def _maxpool2(x):
    N, C, H, W = x.shape
    return x.reshape(N, C, H // 2, 2, W // 2, 2).max(axis=(3, 5))


def _affine_grid(theta, H, W):
    # F.affine_grid, align_corners=False
    xs = (2.0 * jnp.arange(W, dtype=jnp.float32) + 1.0) / W - 1.0
    ys = (2.0 * jnp.arange(H, dtype=jnp.float32) + 1.0) / H - 1.0
    X, Y = jnp.meshgrid(xs, ys)                        # (H, W), X varies along W
    base = jnp.stack([X, Y, jnp.ones_like(X)], -1)     # (H, W, 3)
    return jnp.einsum('hwj,nkj->nhwk', base, theta)    # (N, H, W, 2)


def _grid_sample(x, grid):
    # TODO(synk): bilinear grid_sample (data-dependent gather) stays in plain JAX;
    # no clean Pallas TPU gather equivalent.
    N, C, H, W = x.shape
    ix = ((grid[..., 0] + 1.0) * W - 1.0) * 0.5
    iy = ((grid[..., 1] + 1.0) * H - 1.0) * 0.5
    x0 = jnp.floor(ix)
    y0 = jnp.floor(iy)
    x1 = x0 + 1.0
    y1 = y0 + 1.0
    wx1 = ix - x0
    wx0 = 1.0 - wx1
    wy1 = iy - y0
    wy0 = 1.0 - wy1
    bidx = jnp.arange(N)[:, None, None]

    def tap(xi, yi, wgt):
        valid = (xi >= 0) & (xi <= W - 1) & (yi >= 0) & (yi <= H - 1)
        xc = jnp.clip(xi, 0, W - 1).astype(jnp.int32)
        yc = jnp.clip(yi, 0, H - 1).astype(jnp.int32)
        v = x[bidx, :, yc, xc]                         # (N, H, W, C)
        v = jnp.moveaxis(v, -1, 1)                     # (N, C, H, W)
        return v * (wgt * valid)[:, None, :, :]

    return (tap(x0, y0, wx0 * wy0) + tap(x1, y0, wx1 * wy0) +
            tap(x0, y1, wx0 * wy1) + tap(x1, y1, wx1 * wy1))


def _invert_theta(theta):
    # rev_stn: per-batch inverse of [[theta],[0,0,1]], keep top 2 rows.
    A = theta[:, :, :2]
    t = theta[:, :, 2:3]
    det = A[:, 0, 0] * A[:, 1, 1] - A[:, 0, 1] * A[:, 1, 0]
    A_inv = jnp.stack(
        [jnp.stack([A[:, 1, 1], -A[:, 0, 1]], -1),
         jnp.stack([-A[:, 1, 0], A[:, 0, 0]], -1)], 1) / det[:, None, None]
    t_inv = -jnp.einsum('nij,njk->nik', A_inv, t)
    return jnp.concatenate([A_inv, t_inv], axis=2)


# --------------------------------------------------------------------------- #
# SAHead forward (inference mode)
# --------------------------------------------------------------------------- #
def sa_head_forward(x, p):
    # Inference mode: Dropout is identity, BatchNorm uses running stats (folded
    # into the conv weights / bias).
    # TODO(synk): training-mode stochastic Dropout not implemented.
    N, _, H, W = x.shape

    w1, b1 = _fold_bn(p['c1_w'], p['c1_b'], p['bn1_g'], p['bn1_b'],
                      p['bn1_m'], p['bn1_v'])
    upper = conv2d_same_pallas(x, w1, b1, relu=True)
    # `lower = self.conv1(x)` equals `upper` in inference mode; reuse it.
    lower = upper

    # stn: localization CNN -> fc_loc -> affine_grid -> grid_sample
    # ReLU commutes with MaxPool, so it is fused into the conv kernels.
    l = conv2d_same_pallas(upper, p['loc1_w'], p['loc1_b'], relu=True)  # Conv 7x7 + ReLU
    l = _maxpool2(l)                                                    # MaxPool2d(2)
    l = conv2d_same_pallas(l, p['loc2_w'], p['loc2_b'], relu=True)      # Conv 5x5 + ReLU
    l = _maxpool2(l)
    xs = l.reshape(N, -1)                                               # (N, level*16)
    theta = fc_loc_pallas(xs, p['fc1_w'], p['fc1_b'],
                          p['fc2_w'], p['fc2_b']).reshape(N, 2, 3)
    up = _grid_sample(upper, _affine_grid(theta, H, W))

    # conv2 (two Conv3x3+BN+ReLU blocks), final sigmoid fused into the kernel
    w2a, b2a = _fold_bn(p['c2a_w'], p['c2a_b'], p['bn2a_g'], p['bn2a_b'],
                        p['bn2a_m'], p['bn2a_v'])
    w2b, b2b = _fold_bn(p['c2b_w'], p['c2b_b'], p['bn2b_g'], p['bn2b_b'],
                        p['bn2b_m'], p['bn2b_v'])
    m = conv2d_same_pallas(up, w2a, b2a, relu=True)
    m = conv2d_same_pallas(m, w2b, b2b, relu=True, sigmoid=True)

    # rev_stn with the per-batch inverse affine, then fused channel softmax * lower
    t = _grid_sample(m, _affine_grid(_invert_theta(theta), H, W))
    return softmax_mul_pallas(t, lower)


if __name__ == "__main__":
    key = jax.random.PRNGKey(0)
    keys = jax.random.split(key, 17)
    N, Cin, Cout, H, W = 2, 4, 8, 16, 16
    level = (H // 4) * (W // 4)      # 16 -> fc_loc in_features = level * 16 = 256

    def rnd(k, shape, scale=0.1):
        return scale * jax.random.normal(k, shape, dtype=jnp.float32)

    params = dict(
        c1_w=rnd(keys[0], (Cout, Cin, 3, 3)), c1_b=rnd(keys[1], (Cout,)),
        bn1_g=1.0 + rnd(keys[2], (Cout,)), bn1_b=rnd(keys[3], (Cout,)),
        bn1_m=rnd(keys[4], (Cout,)), bn1_v=jnp.abs(1.0 + rnd(keys[5], (Cout,))),
        c2a_w=rnd(keys[6], (Cout, Cout, 3, 3)), c2a_b=rnd(keys[7], (Cout,)),
        bn2a_g=jnp.ones((Cout,), jnp.float32), bn2a_b=jnp.zeros((Cout,), jnp.float32),
        bn2a_m=jnp.zeros((Cout,), jnp.float32), bn2a_v=jnp.ones((Cout,), jnp.float32),
        c2b_w=rnd(keys[8], (Cout, Cout, 3, 3)), c2b_b=rnd(keys[9], (Cout,)),
        bn2b_g=jnp.ones((Cout,), jnp.float32), bn2b_b=jnp.zeros((Cout,), jnp.float32),
        bn2b_m=jnp.zeros((Cout,), jnp.float32), bn2b_v=jnp.ones((Cout,), jnp.float32),
        loc1_w=rnd(keys[10], (8, Cout, 7, 7)), loc1_b=rnd(keys[11], (8,)),
        loc2_w=rnd(keys[12], (16, 8, 5, 5)), loc2_b=rnd(keys[13], (16,)),
        fc1_w=rnd(keys[14], (16, level * 16)), fc1_b=rnd(keys[15], (16,)),
        # fc_loc[1] init from the module: zero weight, identity-affine bias.
        fc2_w=jnp.zeros((6, 16), jnp.float32),
        fc2_b=jnp.array([1, 0, 0, 0, 1, 0], jnp.float32),
    )
    x = jax.random.normal(keys[16], (N, Cin, H, W), dtype=jnp.float32)

    # Sanity-check the Pallas conv against lax.conv_general_dilated.
    w1f, b1f = _fold_bn(params['c1_w'], params['c1_b'], params['bn1_g'],
                        params['bn1_b'], params['bn1_m'], params['bn1_v'])
    ref = lax.conv_general_dilated(
        x, w1f, (1, 1), 'SAME', dimension_numbers=('NCHW', 'OIHW', 'NCHW'))
    ref = jnp.maximum(ref + b1f[None, :, None, None], 0.0)
    got = jax.block_until_ready(conv2d_same_pallas(x, w1f, b1f, relu=True))
    assert jnp.allclose(got, ref, atol=1e-4, rtol=1e-4), \
        float(jnp.abs(got - ref).max())

    # Sanity-check the fused softmax*gate kernel against plain JAX.
    t_probe = jax.random.normal(keys[0], (N, Cout, H, W), dtype=jnp.float32)
    l_probe = jax.random.normal(keys[1], (N, Cout, H, W), dtype=jnp.float32)
    sm_ref = l_probe * jax.nn.softmax(t_probe, axis=1)
    sm_got = jax.block_until_ready(softmax_mul_pallas(t_probe, l_probe))
    assert jnp.allclose(sm_got, sm_ref, atol=1e-5, rtol=1e-5), \
        float(jnp.abs(sm_got - sm_ref).max())

    out = jax.block_until_ready(jax.jit(sa_head_forward)(x, params))
    assert out.shape == (N, Cout, H, W), out.shape
    assert bool(jnp.all(jnp.isfinite(out)))
    print("KERNEL_OK")
</pallas_src>

<mosaic_0001>
module attributes {stable_mosaic.version = 11 : i64} {
  func.func @kernel(%arg0: i32, %arg1: memref<1x4x342xf32, #tpu.memory_space<vmem>>, %arg2: memref<9x8x4xf32, #tpu.memory_space<vmem>>, %arg3: memref<8x1xf32, #tpu.memory_space<vmem>>, %arg4: memref<1x8x288xf32, #tpu.memory_space<vmem>>) attributes {dimension_semantics = [#tpu.dimension_semantics<parallel>], iteration_bounds = array<i64: 2>, scalar_prefetch = 0 : i64, scratch_operands = 0 : i64, tpu.core_type = #tpu.core_type<tc>, window_params = [{transform_indices = @transform_0, window_bounds = array<i64: 1, 4, 342>}, {pipeline_mode = #tpu.pipeline_mode<synchronous>, transform_indices = @transform_1, window_bounds = array<i64: 9, 8, 4>}, {pipeline_mode = #tpu.pipeline_mode<synchronous>, transform_indices = @transform_2, window_bounds = array<i64: 8, 1>}, {transform_indices = @transform_3, window_bounds = array<i64: 1, 8, 288>}]} {
    %cst = arith.constant 0.000000e+00 : f32
    %0 = vector.broadcast %cst : f32 to vector<8x288xf32>
    %c0 = arith.constant 0 : index
    %c0_0 = arith.constant 0 : index
    %c0_1 = arith.constant 0 : index
    %1 = vector.load %arg2[%c0, %c0_0, %c0_1] : memref<9x8x4xf32, #tpu.memory_space<vmem>>, vector<1x8x4xf32>
    %2 = vector.shape_cast %1 : vector<1x8x4xf32> to vector<8x4xf32>
    %c0_2 = arith.constant 0 : index
    %c0_3 = arith.constant 0 : index
    %c0_4 = arith.constant 0 : index
    %3 = vector.load %arg1[%c0_2, %c0_3, %c0_4] : memref<1x4x342xf32, #tpu.memory_space<vmem>>, vector<1x4x288xf32>
    %4 = vector.shape_cast %3 : vector<1x4x288xf32> to vector<4x288xf32>
    %cst_5 = arith.constant dense<0.000000e+00> : vector<8x288xf32>
    %5 = tpu.matmul %2, %4, %cst_5 {dimension_numbers = #tpu.dot_dimension_numbers<[1], [0], [0], [1], [0, 0, 1, 1], [], []>} : vector<8x4xf32>, vector<4x288xf32>, vector<8x288xf32> -> vector<8x288xf32>
    %6 = arith.addf %0, %5 : vector<8x288xf32>
    %c1 = arith.constant 1 : index
    %c0_6 = arith.constant 0 : index
    %c0_7 = arith.constant 0 : index
    %7 = vector.load %arg2[%c1, %c0_6, %c0_7] : memref<9x8x4xf32, #tpu.memory_space<vmem>>, vector<1x8x4xf32>
    %8 = vector.shape_cast %7 : vector<1x8x4xf32> to vector<8x4xf32>
    %c0_8 = arith.constant 0 : index
    %c0_9 = arith.constant 0 : index
    %c1_10 = arith.constant 1 : index
    %9 = vector.load %arg1[%c0_8, %c0_9, %c1_10] : memref<1x4x342xf32, #tpu.memory_space<vmem>>, vector<1x4x288xf32>
    %10 = vector.shape_cast %9 : vector<1x4x288xf32> to vector<4x288xf32>
    %cst_11 = arith.constant dense<0.000000e+00> : vector<8x288xf32>
    %11 = tpu.matmul %8, %10, %cst_11 {dimension_numbers = #tpu.dot_dimension_numbers<[1], [0], [0], [1], [0, 0, 1, 1], [], []>} : vector<8x4xf32>, vector<4x288xf32>, vector<8x288xf32> -> vector<8x288xf32>
    %12 = arith.addf %6, %11 : vector<8x288xf32>
    %c2 = arith.constant 2 : index
    %c0_12 = arith.constant 0 : index
    %c0_13 = arith.constant 0 : index
    %13 = vector.load %arg2[%c2, %c0_12, %c0_13] : memref<9x8x4xf32, #tpu.memory_space<vmem>>, vector<1x8x4xf32>
    %14 = vector.shape_cast %13 : vector<1x8x4xf32> to vector<8x4xf32>
    %c0_14 = arith.constant 0 : index
    %c0_15 = arith.constant 0 : index
    %c2_16 = arith.constant 2 : index
    %15 = vector.load %arg1[%c0_14, %c0_15, %c2_16] : memref<1x4x342xf32, #tpu.memory_space<vmem>>, vector<1x4x288xf32>
    %16 = vector.shape_cast %15 : vector<1x4x288xf32> to vector<4x288xf32>
    %cst_17 = arith.constant dense<0.000000e+00> : vector<8x288xf32>
    %17 = tpu.matmul %14, %16, %cst_17 {dimension_numbers = #tpu.dot_dimension_numbers<[1], [0], [0], [1], [0, 0, 1, 1], [], []>} : vector<8x4xf32>, vector<4x288xf32>, vector<8x288xf32> -> vector<8x288xf32>
    %18 = arith.addf %12, %17 : vector<8x288xf32>
    %c3 = arith.constant 3 : index
    %c0_18 = arith.constant 0 : index
    %c0_19 = arith.constant 0 : index
    %19 = vector.load %arg2[%c3, %c0_18, %c0_19] : memref<9x8x4xf32, #tpu.memory_space<vmem>>, vector<1x8x4xf32>
    %20 = vector.shape_cast %19 : vector<1x8x4xf32> to vector<8x4xf32>
    %c0_20 = arith.constant 0 : index
    %c0_21 = arith.constant 0 : index
    %c18 = arith.constant 18 : index
    %21 = vector.load %arg1[%c0_20, %c0_21, %c18] : memref<1x4x342xf32, #tpu.memory_space<vmem>>, vector<1x4x288xf32>
    %22 = vector.shape_cast %21 : vector<1x4x288xf32> to vector<4x288xf32>
    %cst_22 = arith.constant dense<0.000000e+00> : vector<8x288xf32>
    %23 = tpu.matmul %20, %22, %cst_22 {dimension_numbers = #tpu.dot_dimension_numbers<[1], [0], [0], [1], [0, 0, 1, 1], [], []>} : vector<8x4xf32>, vector<4x288xf32>, vector<8x288xf32> -> vector<8x288xf32>
    %24 = arith.addf %18, %23 : vector<8x288xf32>
    %c4 = arith.constant 4 : index
    %c0_23 = arith.constant 0 : index
    %c0_24 = arith.constant 0 : index
    %25 = vector.load %arg2[%c4, %c0_23, %c0_24] : memref<9x8x4xf32, #tpu.memory_space<vmem>>, vector<1x8x4xf32>
    %26 = vector.shape_cast %25 : vector<1x8x4xf32> to vector<8x4xf32>
    %c0_25 = arith.constant 0 : index
    %c0_26 = arith.constant 0 : index
    %c19 = arith.constant 19 : index
    %27 = vector.load %arg1[%c0_25, %c0_26, %c19] : memref<1x4x342xf32, #tpu.memory_space<vmem>>, vector<1x4x288xf32>
    %28 = vector.shape_cast %27 : vector<1x4x288xf32> to vector<4x288xf32>
    %cst_27 = arith.constant dense<0.000000e+00> : vector<8x288xf32>
    %29 = tpu.matmul %26, %28, %cst_27 {dimension_numbers = #tpu.dot_dimension_numbers<[1], [0], [0], [1], [0, 0, 1, 1], [], []>} : vector<8x4xf32>, vector<4x288xf32>, vector<8x288xf32> -> vector<8x288xf32>
    %30 = arith.addf %24, %29 : vector<8x288xf32>
    %c5 = arith.constant 5 : index
    %c0_28 = arith.constant 0 : index
    %c0_29 = arith.constant 0 : index
    %31 = vector.load %arg2[%c5, %c0_28, %c0_29] : memref<9x8x4xf32, #tpu.memory_space<vmem>>, vector<1x8x4xf32>
    %32 = vector.shape_cast %31 : vector<1x8x4xf32> to vector<8x4xf32>
    %c0_30 = arith.constant 0 : index
    %c0_31 = arith.constant 0 : index
    %c20 = arith.constant 20 : index
    %33 = vector.load %arg1[%c0_30, %c0_31, %c20] : memref<1x4x342xf32, #tpu.memory_space<vmem>>, vector<1x4x288xf32>
    %34 = vector.shape_cast %33 : vector<1x4x288xf32> to vector<4x288xf32>
    %cst_32 = arith.constant dense<0.000000e+00> : vector<8x288xf32>
    %35 = tpu.matmul %32, %34, %cst_32 {dimension_numbers = #tpu.dot_dimension_numbers<[1], [0], [0], [1], [0, 0, 1, 1], [], []>} : vector<8x4xf32>, vector<4x288xf32>, vector<8x288xf32> -> vector<8x288xf32>
    %36 = arith.addf %30, %35 : vector<8x288xf32>
    %c6 = arith.constant 6 : index
    %c0_33 = arith.constant 0 : index
    %c0_34 = arith.constant 0 : index
    %37 = vector.load %arg2[%c6, %c0_33, %c0_34] : memref<9x8x4xf32, #tpu.memory_space<vmem>>, vector<1x8x4xf32>
    %38 = vector.shape_cast %37 : vector<1x8x4xf32> to vector<8x4xf32>
    %c0_35 = arith.constant 0 : index
    %c0_36 = arith.constant 0 : index
    %c36 = arith.constant 36 : index
    %39 = vector.load %arg1[%c0_35, %c0_36, %c36] : memref<1x4x342xf32, #tpu.memory_space<vmem>>, vector<1x4x288xf32>
    %40 = vector.shape_cast %39 : vector<1x4x288xf32> to vector<4x288xf32>
    %cst_37 = arith.constant dense<0.000000e+00> : vector<8x288xf32>
    %41 = tpu.matmul %38, %40, %cst_37 {dimension_numbers = #tpu.dot_dimension_numbers<[1], [0], [0], [1], [0, 0, 1, 1], [], []>} : vector<8x4xf32>, vector<4x288xf32>, vector<8x288xf32> -> vector<8x288xf32>
    %42 = arith.addf %36, %41 : vector<8x288xf32>
    %c7 = arith.constant 7 : index
    %c0_38 = arith.constant 0 : index
    %c0_39 = arith.constant 0 : index
    %43 = vector.load %arg2[%c7, %c0_38, %c0_39] : memref<9x8x4xf32, #tpu.memory_space<vmem>>, vector<1x8x4xf32>
    %44 = vector.shape_cast %43 : vector<1x8x4xf32> to vector<8x4xf32>
    %c0_40 = arith.constant 0 : index
    %c0_41 = arith.constant 0 : index
    %c37 = arith.constant 37 : index
    %45 = vector.load %arg1[%c0_40, %c0_41, %c37] : memref<1x4x342xf32, #tpu.memory_space<vmem>>, vector<1x4x288xf32>
    %46 = vector.shape_cast %45 : vector<1x4x288xf32> to vector<4x288xf32>
    %cst_42 = arith.constant dense<0.000000e+00> : vector<8x288xf32>
    %47 = tpu.matmul %44, %46, %cst_42 {dimension_numbers = #tpu.dot_dimension_numbers<[1], [0], [0], [1], [0, 0, 1, 1], [], []>} : vector<8x4xf32>, vector<4x288xf32>, vector<8x288xf32> -> vector<8x288xf32>
    %48 = arith.addf %42, %47 : vector<8x288xf32>
    %c8 = arith.constant 8 : index
    %c0_43 = arith.constant 0 : index
    %c0_44 = arith.constant 0 : index
    %49 = vector.load %arg2[%c8, %c0_43, %c0_44] : memref<9x8x4xf32, #tpu.memory_space<vmem>>, vector<1x8x4xf32>
    %50 = vector.shape_cast %49 : vector<1x8x4xf32> to vector<8x4xf32>
    %c0_45 = arith.constant 0 : index
    %c0_46 = arith.constant 0 : index
    %c38 = arith.constant 38 : index
    %51 = vector.load %arg1[%c0_45, %c0_46, %c38] : memref<1x4x342xf32, #tpu.memory_space<vmem>>, vector<1x4x288xf32>
    %52 = vector.shape_cast %51 : vector<1x4x288xf32> to vector<4x288xf32>
    %cst_47 = arith.constant dense<0.000000e+00> : vector<8x288xf32>
    %53 = tpu.matmul %50, %52, %cst_47 {dimension_numbers = #tpu.dot_dimension_numbers<[1], [0], [0], [1], [0, 0, 1, 1], [], []>} : vector<8x4xf32>, vector<4x288xf32>, vector<8x288xf32> -> vector<8x288xf32>
    %54 = arith.addf %48, %53 : vector<8x288xf32>
    %c0_48 = arith.constant 0 : index
    %c0_49 = arith.constant 0 : index
    %55 = vector.load %arg3[%c0_48, %c0_49] : memref<8x1xf32, #tpu.memory_space<vmem>>, vector<8x1xf32>
    %56 = vector.broadcast %55 : vector<8x1xf32> to vector<8x288xf32>
    %57 = arith.addf %54, %56 : vector<8x288xf32>
    %cst_50 = arith.constant 0.000000e+00 : f32
    %58 = vector.broadcast %cst_50 : f32 to vector<8x288xf32>
    %59 = arith.maximumf %57, %58 : vector<8x288xf32>
    %c0_51 = arith.constant 0 : index
    %c0_52 = arith.constant 0 : index
    %c0_53 = arith.constant 0 : index
    %60 = vector.load %arg4[%c0_51, %c0_52, %c0_53] : memref<1x8x288xf32, #tpu.memory_space<vmem>>, vector<1x8x288xf32>
    %61 = vector.shape_cast %60 : vector<1x8x288xf32> to vector<8x288xf32>
    %62 = vector.shape_cast %59 : vector<8x288xf32> to vector<1x8x288xf32>
    tpu.vector_store %arg4[%c0_51, %c0_52, %c0_53], %62 {strides = array<i32>} : memref<1x8x288xf32, #tpu.memory_space<vmem>>, vector<1x8x288xf32>,
    return
  }
  func.func @transform_0(%arg0: i32) -> (i32, i32, i32) {
    %c0_i32 = arith.constant 0 : i32
    %c0_i32_0 = arith.constant 0 : i32
    %c0_i32_1 = arith.constant 0 : i32
    return %arg0, %c0_i32, %c0_i32_0 : i32, i32, i32
  }
  func.func @transform_1(%arg0: i32) -> (i32, i32, i32) {
    %c0_i32 = arith.constant 0 : i32
    %c0_i32_0 = arith.constant 0 : i32
    %c0_i32_1 = arith.constant 0 : i32
    %c0_i32_2 = arith.constant 0 : i32
    return %c0_i32, %c0_i32_0, %c0_i32_1 : i32, i32, i32
  }
  func.func @transform_2(%arg0: i32) -> (i32, i32) {
    %c0_i32 = arith.constant 0 : i32
    %c0_i32_0 = arith.constant 0 : i32
    %c0_i32_1 = arith.constant 0 : i32
    return %c0_i32, %c0_i32_0 : i32, i32
  }
  func.func @transform_3(%arg0: i32) -> (i32, i32, i32) {
    %c0_i32 = arith.constant 0 : i32
    %c0_i32_0 = arith.constant 0 : i32
    %c0_i32_1 = arith.constant 0 : i32
    return %arg0, %c0_i32, %c0_i32_0 : i32, i32, i32
  }
}

</mosaic_0001>

<bundles_post_ra>
// kernel: tpu_custom_call.1
= control target key start
LH: loop header
LB: loop body
LE: loop exit
PB: predicated region body
PF: predicated region fallthrough
CT: control target
= control target key end

     0   :  { %8 = vsyncpa [#allocation3], 0  ;;  %s2301_s0 = inlined_call_operand.vmem [shape: f32[2,4,342], index: 0, kind: input, shape index: {}]   ;;  %s2302_s1 = inlined_call_operand.vmem [shape: f32[9,8,4], index: 1, kind: input, shape index: {}]   ;;  %s2303_s2 = inlined_call_operand.vmem [shape: f32[8,1], index: 2, kind: input, shape index: {}]   ;;  %s2304_s3 = inlined_call_operand.hbm [shape: f32[2,8,288], index: 3, kind: output, shape index: {}]  }
   0x1   :  { %10 = vsyncpa [#allocation3 + $0x1], 0  ;;  %s2052_s12 = smov 0   ;;  %s2054_s13 = smov 0  }
   0x2   :  { %s2056_s14 = smov 0   ;;  %s2058_s15 = smov 0  }
   0x3 LB: > { %s2073_s16 = sadd.s32 4294967295, %s2018_s15   ;;  %s1761_s17 = sadd.s32 4294967294, %s2018_s15   ;;  %s2018_s15 = sphi %s2058_s15, %s2310_s15   ;;  %s2014_s14 = sphi %s2056_s14, %s2309_s14   ;;  %s2010_s13 = sphi %s2054_s13, %s2308_s13   ;;  %s2006_s12 = sphi %s2052_s12, %s2307_s12  }
   0x4   : > { %s2077_s18 = sadd.s32 1, %s2018_s15   ;;  %s91_s19 = sadd.s32 1, %s2014_s14 }
   0x5   : > { %s88_s20 = ssub.s32 %s2018_s15, %s2077_s18  ;;  %p101_p0 = scmp.ne.s32.totalorder %s2014_s14, %s2010_s13 }
   0x6   : > { %p89_p1 = scmp.eq.s32.totalorder %s88_s20, 0  ;;  %p102_p2 = scmp.eq.s32.totalorder %s2073_s16, 1 }
   0x7   : > { %p107_p3 = scmp.ne.s32.totalorder %s2010_s13, %s2006_s12  ;;  %p108_p4 = scmp.eq.s32.totalorder %s1761_s17, 1 }
   0x8   : > { %s2088_s21 = scalar_select %p89_p1, %s2014_s14, %s91_s19  }
   0x9   : > { %p2090_p5 = por %p102_p2, %p101_p0  ;;  %p2094_p6 = por %p108_p4, %p107_p3 }
   0xa   : > { %p1764_p7 = scmp.ge.s32.totalorder %s2018_s15, 1  ;;  %p140_p8 = scmp.lt.s32.totalorder %s2018_s15, 3 }
   0xc   : > { %p141_p9 = pnand %p1764_p7, %p140_p8 }
   0xd   : > { %p164_p10 = scmp.lt.s32.totalorder (!%p141_p9), %s2073_s16, 1  ;;  %v2020_v0 = vmov (!%p141_p9), 0.0   ;;  %vm2021_vm0 = vmmov (!%p141_p9), 0   ;;  %s2022_s29 = smov (!%p141_p9), 127   ;;  %v1671_v11 = vld [vmem:[%s2303_s2] sm:$0xff] (!%p141_p9)  ;;  %v2030_v12 = vmov (!%p141_p9), 0  }
   0xe   : > { %144 = sbr.rel (%p141_p9) target bundleno = 446 (0x1be), region = 32  ;;  %1840 = vmatprep.subr.mxu1 (!%p141_p9), %v2020_v0  ;;  %261 = vmatprep.mubr.f32.mxu0 (!%p141_p9), %v2020_v0  ;;  %s2023_s30 = smov (!%p141_p9), 126   ;;  %vm190_vm1 = vcmask (!%p141_p9), 1043456   ;;  %vm183_vm2 = vcmask (!%p141_p9), 1039360   ;;  %v1766_v18 = vld [vmem:[%s2302_s1 + $0x8] sm:$0xff] (!%p141_p9)  ;;  %vm186_vm3 = vcmask (!%p141_p9), 31744  }
   0xf   : > { %1842 = vmatprep.mubr.msk.f32.mxu1 (!%p141_p9), %vm2021_vm0, %v2020_v0  ;;  %s2024_s4 = smov (!%p141_p9), 110   ;;  %s2025_s5 = smov (!%p141_p9), 109   ;;  %1954 = vset.pattern.permute.xlu0 (!%p141_p9), %v2030_v12  ;;  %vm501_vm4 = vcmask (!%p141_p9), 1031168   ;;  %v169_v24 = vld [vmem:[%s2302_s1] sm:$0xff] (!%p141_p9)  ;;  %vm670_vm5 = vcmask (!%p141_p9), 900096   ;;  %v1777_v29 = vld [vmem:[%s2302_s1 + $0x10] sm:$0xff] (!%p141_p9) }
  0x10   : > { %s2026_s6 = smov (!%p141_p9), 108   ;;  %s2027_s7 = smov (!%p141_p9), 92   ;;  %v1783_v31 = vld [vmem:[%s2302_s1 + $0x18] sm:$0xff] (!%p141_p9)  ;;  %vm839_vm6 = vcmask (!%p141_p9), 891904   ;;  %v1789_v34 = vld [vmem:[%s2302_s1 + $0x20] sm:$0xff] (!%p141_p9)  ;;  %v1795_v39 = vld [vmem:[%s2302_s1 + $0x28] sm:$0xff] (!%p141_p9) }
  0x11   : > { %s2028_s8 = smov (!%p141_p9), 91   ;;  %s2029_s9 = smov (!%p141_p9), 90   ;;  %vm1008_vm7 = vcmask (!%p141_p9), 883712   ;;  %v1801_v46 = vld [vmem:[%s2302_s1 + $0x30] sm:$0xff] (!%p141_p9)  ;;  %vm1177_vm8 = vcmask (!%p141_p9), 752640   ;;  %v1807_v49 = vld [vmem:[%s2302_s1 + $0x38] sm:$0xff] (!%p141_p9) }
  0x12   : > { %v1813_v53 = vld [vmem:[%s2302_s1 + $0x40] sm:$0xff] (!%p141_p9)  ;;  %vm1346_vm9 = vcmask (!%p141_p9), 744448   ;;  %vm1515_vm10 = vcmask (!%p141_p9), 736256   ;;  %s161_s17 = sand.u32 (!%p141_p9), 1, %s2010_s13   ;;  %vm1685_vm11 = vcmask (!%p141_p9), 261120  }
  0x13   : > { %s1901_s19 = smul.u32 (!%p141_p9), 24, %s161_s17 }
  0x15   : > { %s165_s24 = scalar_select %p164_p10, %s2073_s16, 1 }
  0x16   : > { %s163_s20 = scalar_lea.vmem [#allocation2], %s1901_s19 }
  0x17   : > { %s1902_s25 = smul.u32 12, %s165_s24 }
  0x18   : > { %s1903_s24 = smul.u32 384, %s2073_s16 }
  0x19   : > { %s2107_s28 = scalar_lea.vmem %s2301_s0, %s1902_s25  ;;  %s1702_s25 = sshll.u32 %s163_s20, 4  ;;  %s2261_s25 = int_to_ptr.vmem [resolvable:$true] %s1702_s25 }
  0x1a   : > { %v2112_v1 = vld [vmem:[%s2107_s28] sm:$0xff]  ;;  %v2118_v3 = vld [vmem:[%s2107_s28 + $0x8] sm:$0xf]  ;;  %s1956_s16 = scalar_lea.vmem %s2261_s25, 384 }
  0x1b   : > { %177 = vrot.lane.b32.xlu1 %v2112_v1, %s2022_s29  ;;  %v176_v2 = vcombine.high %v2112_v1, %v2112_v1  ;;  %v491_v4 = vld [vmem:[%s2107_s28 + $0x8] sm:$0xf]  ;;  %p1957_p11 = scmp.ne.s32.totalorder %s2261_s25, %s1956_s16 }
  0x1c   : > { %v660_v5 = vld [vmem:[%s2107_s28 + $0x8] sm:$0xf] }
  0x1d   : > { %179 = vrot.lane.b32.xlu0 %v176_v2, %s2022_s29  ;;  %v829_v6 = vld [vmem:[%s2107_s28 + $0x8] sm:$0xf]  ;;  %p1958_p12 = pnand %p1957_p11, %p2090_p5 }
  0x1e   : > { %v998_v7 = vld [vmem:[%s2107_s28 + $0x8] sm:$0xf] }
  0x1f   : > { %497 = vrot.lane.b32.xlu1 %v176_v2, %s2023_s30  ;;  %v1167_v8 = vld [vmem:[%s2107_s28 + $0x8] sm:$0xf]  ;;  %p1959_p13 = pneg %p1958_p12 }
  0x20   : > { %v1336_v9 = vld [vmem:[%s2107_s28 + $0x8] sm:$0xf] }
  0x21   : > { %181 = vrot.lane.b32.xlu0 %v2118_v3, %s2022_s29  ;;  %v1505_v10 = vld [vmem:[%s2107_s28 + $0x8] sm:$0xf]  ;;  %s2259_s28 = scalar_lea.hbm %s2304_s3, %s1903_s24  ;;  %s1688_s29 = scalar_lea.sflag [#allocation3], %s161_s17 }
  0x23   : > { %495 = vrot.lane.b32.xlu1 %v2112_v1, %s2023_s30 }
  0x25   : > { %499 = vrot.lane.b32.xlu0 %v491_v4, %s2023_s30  ;;  %s2031_s30 = smov [#allocation2]  }
  0x27   : > { %668 = vrot.lane.b32.xlu1 %v660_v5, %s2024_s4 }
  0x29   : > { %666 = vrot.lane.b32.xlu0 %v176_v2, %s2024_s4 }
  0x2b   : > { %835 = vrot.lane.b32.xlu1 %v176_v2, %s2025_s5 }
  0x2d   : > { %664 = vrot.lane.b32.xlu0 %v2112_v1, %s2024_s4  ;;  %s1960_s4 = sshll.u32 %s2031_s30, 4  ;;  %s1961_s4 = int_to_ptr.vmem [resolvable:$false] %s1960_s4 }
  0x2e   : > { %p1963_p0 = scmp.lt.s32.totalorder %s2261_s25, %s1961_s4 }
  0x2f   : > { %833 = vrot.lane.b32.xlu1 %v2112_v1, %s2025_s5 }
  0x31   : > { %837 = vrot.lane.b32.xlu0 %v829_v6, %s2025_s5  ;;  %s1962_s5 = scalar_lea.vmem %s1961_s4, 768 }
  0x32   : > { %p1964_p1 = scmp.lt.s32.totalorder %s1962_s5, %s1956_s16 }
  0x33   : > { %1006 = vrot.lane.b32.xlu1 %v998_v7, %s2026_s6 }
  0x34   : > { %p1965_p2 = por %p1964_p1, %p1963_p0 }
  0x35   : > { %1004 = vrot.lane.b32.xlu0 %v176_v2, %s2026_s6 }
  0x36   : > { %p1966_p3 = pnand %p1965_p2, %p1959_p13 }
  0x37   : > { %1173 = vrot.lane.b32.xlu1 %v176_v2, %s2027_s7 }
  0x39   : > { %1002 = vrot.lane.b32.xlu0 %v2112_v1, %s2026_s6 }
  0x3b   : > { %1171 = vrot.lane.b32.xlu1 %v2112_v1, %s2027_s7 }
  0x3d   : > { %1175 = vrot.lane.b32.xlu0 %v1167_v8, %s2027_s7 }
  0x3f   : > { %1344 = vrot.lane.b32.xlu1 %v1336_v9, %s2028_s8 }
  0x41   : > { %1342 = vrot.lane.b32.xlu0 %v176_v2, %s2028_s8 }
  0x43   : > { %1511 = vrot.lane.b32.xlu1 %v176_v2, %s2029_s9 }
  0x45   : > { %1340 = vrot.lane.b32.xlu0 %v2112_v1, %s2028_s8 }
  0x47   : > { %1509 = vrot.lane.b32.xlu1 %v2112_v1, %s2029_s9 }
  0x49   : > { %1513 = vrot.lane.b32.xlu0 %v1505_v10, %s2029_s9 }
  0x4d   : > { %1674 = vperm.xlu0 %1954, %v1671_v11  }
  0x8d   : > { %v178_v13 = vpop.permute.xlu1 %177 }
  0x8f   : > { %v180_v14 = vpop.permute.xlu0 %179 }
  0x90   : > { %v184_v19 = vsel %vm183_vm2, %v178_v13, %v180_v14 }
  0x91   : > { %v498_v15 = vpop.permute.xlu1 %497 }
  0x93   : > { %v182_v16 = vpop.permute.xlu0 %181 }
  0x94   : > { %1841 = vmatpush3.msk.msra.mxu1 %vm190_vm1, %v182_v16  ;;  %v185_v17 = vsel %vm183_vm2, %v180_v14, %v182_v16 }
  0x95   : > { %1767 = vmatprep.subr.msk.mxu0 %vm190_vm1, %v185_v17  ;;  %v496_v20 = vpop.permute.xlu1 %495  ;;  %1843 = vmatmul.mubr.msk.f32.vlgmr.msra.gmra.mrb[0].mxu1 %vm186_vm3, %v1766_v18 }
  0x96   : > { %1768 = vmatpush1.msk.msra.mxu0 %vm190_vm1, %v184_v19  ;;  %1845 = vmatprep.subr.mxu1 %v2020_v0  ;;  %v502_v26 = vsel %vm501_vm4, %v496_v20, %v498_v15 }
  0x97   : > { %1769 = vmatmul.mubr.msk.f32.vlgmr.msra.gmra.mrb[0].mxu0 %vm186_vm3, %v1766_v18  ;;  %1772 = vmatprep.subr.msk.mxu0 %vm190_vm1, %v176_v2  ;;  %v500_v21 = vpop.permute.xlu0 %499 }
  0x98   : > { %1773 = vmatpush1.msk.msra.mxu0 %vm190_vm1, %v2112_v1  ;;  %v503_v22 = vsel %vm501_vm4, %v498_v15, %v500_v21  ;;  %1846 = vmatpush3.msk.msra.mxu1 %vm190_vm1, %v2118_v3 }
  0x99   : > { %1778 = vmatprep.subr.msk.mxu0 %vm190_vm1, %v503_v22  ;;  %1847 = vmatprep.mubr.msk.f32.mxu1 %vm2021_vm0, %v2020_v0  ;;  %v669_v23 = vpop.permute.xlu1 %668 }
  0x9a   : > { %1850 = vmatprep.subr.mxu1 %v2020_v0  ;;  %411 = vmatprep.mubr.f32.mxu0 %v2020_v0 }
  0x9b   : > { %1848 = vmatmul.mubr.msk.f32.vlgmr.msra.gmra.mrb[2].mxu1 %vm186_vm3, %v169_v24  ;;  %v667_v25 = vpop.permute.xlu0 %666 }
  0x9c   : > { %1851 = vmatpush3.msk.msra.mxu1 %vm190_vm1, %v500_v21  ;;  %1852 = vmatprep.mubr.msk.f32.mxu1 %vm2021_vm0, %v2020_v0  ;;  %v672_v28 = vsel %vm670_vm5, %v667_v25, %v669_v23 }
  0x9d   : > { %1855 = vmatprep.subr.mxu1 %v2020_v0  ;;  %v836_v27 = vpop.permute.xlu1 %835 }
  0x9f   : > { %1774 = vmatmul.mubr.msk.f32.vlgmr.msra.gmra.mrb[0].mxu0 %vm186_vm3, %v169_v24  ;;  %v665_v30 = vpop.permute.xlu0 %664  ;;  %1853 = vmatmul.mubr.msk.f32.vlgmr.msra.gmra.mrb[4].mxu1 %vm186_vm3, %v1777_v29 }
  0xa0   : > { %1779 = vmatpush1.msk.msra.mxu0 %vm190_vm1, %v502_v26  ;;  %577 = vmatprep.mubr.f32.mxu0 %v2020_v0  ;;  %v671_v35 = vsel %vm670_vm5, %v665_v30, %v667_v25 }
  0xa1   : > { %1784 = vmatprep.subr.msk.mxu0 %vm190_vm1, %v672_v28  ;;  %1856 = vmatpush3.msk.msra.mxu1 %vm190_vm1, %v669_v23  ;;  %v834_v32 = vpop.permute.xlu1 %833 }
  0xa2   : > { %1857 = vmatprep.mubr.msk.f32.mxu1 %vm2021_vm0, %v2020_v0  ;;  %1860 = vmatprep.subr.mxu1 %v2020_v0  ;;  %v840_v42 = vsel %vm839_vm6, %v834_v32, %v836_v27 }
  0xa3   : > { %v838_v33 = vpop.permute.xlu0 %837  ;;  %1858 = vmatmul.mubr.msk.f32.vlgmr.msra.gmra.mrb[6].mxu1 %vm186_vm3, %v1783_v31 }
  0xa4   : > { %1861 = vmatpush3.msk.msra.mxu1 %vm190_vm1, %v838_v33  ;;  %1862 = vmatprep.mubr.msk.f32.mxu1 %vm2021_vm0, %v2020_v0  ;;  %v841_v37 = vsel %vm839_vm6, %v836_v27, %v838_v33 }
  0xa5   : > { %v1007_v36 = vpop.permute.xlu1 %1006  ;;  %1865 = vmatprep.subr.mxu1 %v2020_v0 }
  0xa7   : > { %1780 = vmatmul.mubr.msk.f32.vlgmr.msra.gmra.mrb[0].mxu0 %vm186_vm3, %v1777_v29  ;;  %v1005_v38 = vpop.permute.xlu0 %1004  ;;  %1863 = vmatmul.mubr.msk.f32.vlgmr.msra.gmra.mrb[8].mxu1 %vm186_vm3, %v1789_v34 }
  0xa8   : > { %1785 = vmatpush1.msk.msra.mxu0 %vm190_vm1, %v671_v35  ;;  %746 = vmatprep.mubr.f32.mxu0 %v2020_v0  ;;  %v1010_v44 = vsel %vm1008_vm7, %v1005_v38, %v1007_v36 }
  0xa9   : > { %1790 = vmatprep.subr.msk.mxu0 %vm190_vm1, %v841_v37  ;;  %v1174_v40 = vpop.permute.xlu1 %1173  ;;  %1866 = vmatpush3.msk.msra.mxu1 %vm190_vm1, %v1007_v36 }
  0xaa   : > { %1867 = vmatprep.mubr.msk.f32.mxu1 %vm2021_vm0, %v2020_v0  ;;  %1870 = vmatprep.subr.mxu1 %v2020_v0 }
  0xab   : > { %v1003_v41 = vpop.permute.xlu0 %1002  ;;  %1868 = vmatmul.mubr.msk.f32.vlgmr.msra.gmra.mrb[10].mxu1 %vm186_vm3, %v1795_v39 }
  0xac   : > { %1872 = vmatprep.mubr.msk.f32.mxu1 %vm2021_vm0, %v2020_v0  ;;  %v1009_v50 = vsel %vm1008_vm7, %v1003_v41, %v1005_v38 }
  0xad   : > { %v1172_v43 = vpop.permute.xlu1 %1171 }
  0xae   : > { %v1178_v55 = vsel %vm1177_vm8, %v1172_v43, %v1174_v40 }
  0xaf   : > { %1786 = vmatmul.mubr.msk.f32.vlgmr.msra.gmra.mrb[0].mxu0 %vm186_vm3, %v1783_v31  ;;  %v1176_v45 = vpop.permute.xlu0 %1175 }
  0xb0   : > { %1791 = vmatpush1.msk.msra.mxu0 %vm190_vm1, %v840_v42  ;;  %915 = vmatprep.mubr.f32.mxu0 %v2020_v0  ;;  %v1179_v51 = vsel %vm1177_vm8, %v1174_v40, %v1176_v45 }
  0xb1   : > { %1796 = vmatprep.subr.msk.mxu0 %vm190_vm1, %v1010_v44  ;;  %1871 = vmatpush3.msk.msra.mxu1 %vm190_vm1, %v1176_v45  ;;  %v1345_v47 = vpop.permute.xlu1 %1344 }
  0xb2   : > { %1873 = vmatmul.mubr.msk.f32.vlgmr.msra.gmra.mrb[12].mxu1 %vm186_vm3, %v1801_v46  ;;  %1875 = vmatprep.subr.mxu1 %v2020_v0 }
  0xb3   : > { %v1343_v48 = vpop.permute.xlu0 %1342  ;;  %1876 = vmatpush3.msk.msra.mxu1 %vm190_vm1, %v1345_v47  ;;  %1877 = vmatprep.mubr.msk.f32.mxu1 %vm2021_vm0, %v2020_v0 }
  0xb4   : > { %1880 = vmatprep.subr.mxu1 %v2020_v0  ;;  %v1348_v56 = vsel %vm1346_vm9, %v1343_v48, %v1345_v47 }
  0xb5   : > { %v1512_v57 = vpop.permute.xlu1 %1511 }
  0xb6   : > { %1878 = vmatmul.mubr.msk.f32.vlgmr.msra.gmra.mrb[14].mxu1 %vm186_vm3, %v1807_v49 }
  0xb7   : > { %1792 = vmatmul.mubr.msk.f32.vlgmr.msra.gmra.mrb[0].mxu0 %vm186_vm3, %v1789_v34  ;;  %v1341_v52 = vpop.permute.xlu0 %1340  ;;  %1882 = vmatprep.mubr.msk.f32.mxu1 %vm2021_vm0, %v2020_v0 }
  0xb8   : > { %1797 = vmatpush1.msk.msra.mxu0 %vm190_vm1, %v1009_v50  ;;  %1084 = vmatprep.mubr.f32.mxu0 %v2020_v0  ;;  %v1347_v58 = vsel %vm1346_vm9, %v1341_v52, %v1343_v48 }
  0xb9   : > { %1802 = vmatprep.subr.msk.mxu0 %vm190_vm1, %v1179_v51  ;;  %v1510_v60 = vpop.permute.xlu1 %1509 }
  0xba   : > { %v1516_v61 = vsel %vm1515_vm10, %v1510_v60, %v1512_v57 }
  0xbb   : > { %v1514_v54 = vpop.permute.xlu0 %1513 }
  0xbc   : > { %1881 = vmatpush3.msk.msra.mxu1 %vm190_vm1, %v1514_v54  ;;  %v1517_v59 = vsel %vm1515_vm10, %v1512_v57, %v1514_v54 }
  0xbd   : > { %1883 = vmatmul.mubr.msk.f32.vlgmr.msra.gmra.mrb[16].mxu1 %vm186_vm3, %v1813_v53 }
  0xbf   : > { %1798 = vmatmul.mubr.msk.f32.vlgmr.msra.gmra.mrb[0].mxu0 %vm186_vm3, %v1795_v39 }
  0xc0   : > { %1803 = vmatpush1.msk.msra.mxu0 %vm190_vm1, %v1178_v55  ;;  %1253 = vmatprep.mubr.f32.mxu0 %v2020_v0 }
  0xc1   : > { %1808 = vmatprep.subr.msk.mxu0 %vm190_vm1, %v1348_v56 }
  0xc7   : > { %1804 = vmatmul.mubr.msk.f32.vlgmr.msra.gmra.mrb[0].mxu0 %vm186_vm3, %v1801_v46 }
  0xc8   : > { %1809 = vmatpush1.msk.msra.mxu0 %vm190_vm1, %v1347_v58  ;;  %1422 = vmatprep.mubr.f32.mxu0 %v2020_v0 }
  0xc9   : > { %1814 = vmatprep.subr.msk.mxu0 %vm190_vm1, %v1517_v59 }
  0xcc   : > { %v1675_v22 = vpop.permute.xlu0 %1674 }
  0xcf   : > { %1810 = vmatmul.mubr.msk.f32.vlgmr.msra.gmra.mrb[0].mxu0 %vm186_vm3, %v1807_v49 }
  0xd0   : > { %1815 = vmatpush1.msk.msra.mxu0 %vm190_vm1, %v1516_v61  ;;  %1591 = vmatprep.mubr.f32.mxu0 %v2020_v0 }
  0xd7   : > { %1816 = vmatmul.mubr.msk.f32.vlgmr.msra.gmra.mrb[0].mxu0 %vm186_vm3, %v1813_v53 }
 0x168   : > { %v334_v62 = vpop.f32.mrb[0].mxu1 }
 0x169   : > { %v1844_v63 = vpop.f32.mrb[1].mxu1 }
 0x16e   : > { %v484_v1 = vpop.f32.mrb[2].mxu1 }
 0x16f   : > { %v485_v2 = vadd.f32 %v484_v1, %v334_v62  ;;  %v1849_v3 = vpop.f32.mrb[3].mxu1 }
 0x172   : > { %v650_v4 = vpop.f32.mrb[4].mxu1 }
 0x173   : > { %v656_v5 = vadd.f32 %v650_v4, %v485_v2  ;;  %v1854_v6 = vpop.f32.mrb[5].mxu1 }
 0x176   : > { %v819_v7 = vpop.f32.mrb[6].mxu1 }
 0x177   : > { %v825_v8 = vadd.f32 %v819_v7, %v656_v5  ;;  %v1859_v9 = vpop.f32.mrb[7].mxu1 }
 0x17a   : > { %v988_v10 = vpop.f32.mrb[8].mxu1 }
 0x17b   : > { %v994_v11 = vadd.f32 %v988_v10, %v825_v8  ;;  %v1864_v12 = vpop.f32.mrb[9].mxu1 }
 0x17e   : > { %v1157_v13 = vpop.f32.mrb[10].mxu1 }
 0x17f   : > { %v1163_v14 = vadd.f32 %v1157_v13, %v994_v11  ;;  %v1869_v0 = vpop.f32.mrb[11].mxu1 }
 0x185   : > { %v1326_v15 = vpop.f32.mrb[12].mxu1 }
 0x186   : > { %v1332_v16 = vadd.f32 %v1326_v15, %v1163_v14  ;;  %v1874_v17 = vpop.f32.mrb[13].mxu1 }
 0x189   : > { %v1495_v18 = vpop.f32.mrb[14].mxu1 }
 0x18a   : > { %v1501_v19 = vadd.f32 %v1495_v18, %v1332_v16  ;;  %v1879_v20 = vpop.f32.mrb[15].mxu1 }
 0x190   : > { %v1664_v21 = vpop.f32.mrb[16].mxu1 }
 0x191   : > { %v1670_v23 = vadd.f32 %v1664_v21, %v1501_v19  ;;  %v1884_v24 = vpop.f32.mrb[17].mxu1 }
 0x193   : > { %v1679_v25 = vadd.f32 %v1675_v22, %v1670_v23 }
 0x195   : > { %v1682_v26 = vmax.f32 %v1679_v25, 0.0 }
 0x197   : > { %1686 = vst.msk [vmem:[%s163_s20 + $0x10] sm:$0xff] %vm1685_vm11, %v1682_v26 }
 0x1aa   : > { %v1593_v27 = vpop.f32.mrb[0].mxu0 }
 0x1ab   : > { %v1677_v28 = vadd.f32 %v1675_v22, %v1593_v27  ;;  %v1595_v29 = vpop.f32.mrb[1].mxu0 }
 0x1ac   : > { %v1678_v30 = vadd.f32 %v1675_v22, %v1595_v29 }
 0x1ad   : > { %v1680_v31 = vmax.f32 %v1677_v28, 0.0 }
 0x1ae   : > { %v1681_v32 = vmax.f32 %v1678_v30, 0.0 }
 0x1af   : > { %1683 = vst [vmem:[%s163_s20] sm:$0xff] %v1680_v31 }
 0x1b0   : > { %1684 = vst [vmem:[%s163_s20 + $0x8] sm:$0xff] %v1681_v32 }
 0x1b1   : > { %1969 = shalt.err (!%p1966_p3)
}
 0x1b2   : > { %s1970_s6 = scalar_lea.hbm %s2259_s28, 384  ;;  %s1974_s9 = scalar_lea.hbm %s2304_s3, 768 }
 0x1b3   : > { %p1971_p4 = scmp.ne.s32.totalorder %s2259_s28, %s1970_s6  ;;  %p1975_p9 = scmp.lt.u32.totalorder %s2259_s28, %s2304_s3 }
 0x1b4   : > { %p1976_p10 = scmp.lt.u32.totalorder %s1974_s9, %s1970_s6  ;;  %p1978_p12 = scmp.lt.u32.totalorder %s1970_s6, %s2259_s28 }
 0x1b5   : > { %p1972_p7 = pnand %p1971_p4, %p2090_p5 }
 0x1b6   : > { %p1977_p11 = por %p1976_p10, %p1975_p9 }
 0x1b7   : > { %p1973_p8 = pneg %p1972_p7 }
 0x1b8   : > { %p1979_p13 = por %p1978_p12, %p1977_p11 }
 0x1ba   : > { %p1980_p0 = pnand %p1979_p13, %p1973_p8 }
 0x1bc   : > { %1983 = shalt.err (!%p1980_p0)
}
 0x1bd   : > { %1904 = dma.vmem_to_hbm [thread:$0]  (%p2090_p5), %s2261_s25, 384, %s2259_s28, %s1688_s29  }
 0x1be PF: > { %p1910_p1 = scmp.ge.s32.totalorder %s2018_s15, 2  ;;  %s1714_s17 = sand.u32 1, %s2006_s12  }
 0x1bf   : > { %s1715_s19 = scalar_lea.sflag [#allocation3], %s1714_s17 }
 0x1c0   : > { %p1907_p2 = pnand %p1910_p1, %p2094_p6 }
 0x1c2   : > { %2001 = dma.done.wait (!%p1907_p2), %s1715_s19, 384  }
 0x1c3   : > { %2003 = vsyncadd (!%p1907_p2), %s1715_s19, 4294966912  ;;  %p13_p3 = scmp.ge.s32.totalorder %s2077_s18, 4   ;;  %s2307_s12 = smov %s2010_s13 }
 0x1c4   : > { %s2308_s13 = smov %s2014_s14  ;;  %s2309_s14 = smov %s2088_s21 }
 0x1c5   : > { %s2310_s15 = smov %s2077_s18  ;;  %15 = sbr.rel (!%p13_p3) target bundleno = 3 (0x3), region = 75 }
 0x1cc   :  { %1720 = vsyncpa [#allocation3], 1 }
 0x1cd   :  { %1722 = vsyncpa [#allocation3 + $0x1], 1 }

</bundles_post_ra>
